<compile_context>
chip_gen: v5e
topology: v5e:2x2
jax: 0.10.0
libtpu: 0.0.40
codegen_flags: <defaults>
</compile_context>

<pallas_src>
import functools

import jax
import jax.numpy as jnp
from jax.experimental import pallas as pl
from jax.experimental.pallas import tpu as pltpu


def _se_kernel(x_ref, w_ref, o_ref, *, chid, negative_slope):
    # x_ref: (Nb, C, HW)   activations, channels on sublanes, HW on lanes
    # w_ref: (C, 2*chid)   [l1.weight.T | l2.weight] fused into one operand
    # o_ref: (Nb, C, HW)
    x = x_ref[...]                                            # (Nb, C, HW) f32
    hw = x.shape[-1]

    # --- Squeeze: global average pool over the lane (H*W) axis -> (Nb, C, 1)
    y = jnp.sum(x, axis=-1, keepdims=True) * (1.0 / hw)

    # Static slices of the fused weight tile (compile-time offsets, no copies).
    w1 = w_ref[:, :chid]                                      # (C, chid) = l1.weight.T
    w2 = w_ref[:, chid:]                                      # (C, chid) = l2.weight

    # --- Excitation MLP: tiny contraction dims -> VPU broadcast-mul + reduce.
    # h[n, j] = sum_c W1[c, j] * y[n, c]      (sublane reduction)
    h = jnp.sum(w1[None, :, :] * y, axis=1, keepdims=True)    # (Nb, 1, chid)
    h = jnp.where(h > 0, h, negative_slope * h)               # LeakyReLU
    # s[n, c] = sum_j W2[c, j] * h[n, j]      (lane reduction)
    s = jnp.sum(w2[None, :, :] * h, axis=-1, keepdims=True)   # (Nb, C, 1)
    s = jax.nn.sigmoid(s)                                     # exp + recip on EUP

    # --- Scale: lane-dense elementwise multiply, unmasked lane-dense store.
    o_ref[...] = (x * s).astype(o_ref.dtype)


def _choose_batch_block(N, C, HW, itemsize=4, target_bytes=2 << 20):
    """Largest divisor Nb of N whose x-block stays <= target_bytes while keeping
    the 'parallel' grid trip count >= 2 (feeds both v7x TensorCores)."""
    per_img = max(1, C * HW * itemsize)
    best = 1
    for nb in range(1, N + 1):
        if N % nb != 0:
            continue
        fits = nb * per_img <= target_bytes
        feeds_cores = (N // nb) >= 2 or N == 1
        if fits and feeds_cores:
            best = nb
    return best


def se_forward(x_nchw, l1_weight, l2_weight, negative_slope=0.01):
    """SELayer forward.

    x_nchw   : (N, C, H, W)  float32
    l1_weight: (C//r, C)     PyTorch nn.Linear weight (out_features, in_features)
    l2_weight: (C, C//r)     PyTorch nn.Linear weight
    """
    N, C, H, W = x_nchw.shape
    HW = H * W
    chid = l1_weight.shape[0]
    assert l1_weight.shape == (chid, C)
    assert l2_weight.shape == (C, chid)

    # NCHW -> (N, C, H*W): contiguous reshape; channels on sublanes, spatial on
    # lanes.  H*W a multiple of 128 keeps stores unmasked.
    x = x_nchw.reshape(N, C, HW).astype(jnp.float32)

    # Fused, kernel-friendly weight layout: (C, 2*chid) = [l1.T | l2].
    w_cat = jnp.concatenate(
        [jnp.transpose(l1_weight, (1, 0)), l2_weight], axis=1
    ).astype(jnp.float32)

    # Batch several images per grid step so each DMA block moves ~1-4 MiB,
    # while keeping >= 2 grid steps so v7x's two TensorCores are both used.
    nb = _choose_batch_block(N, C, HW, itemsize=4, target_bytes=2 << 20)
    grid_n = N // nb

    # VMEM budget: double-buffered in + out blocks plus the (tiny) weight tile
    # and headroom.  Stays well under v5e's 16 MiB / v7x's 32 MiB scoped caps.
    block_bytes = nb * C * HW * 4
    vmem_limit = int(min(96 << 20, max(16 << 20, 4 * block_bytes + (2 << 20))))

    kernel = functools.partial(
        _se_kernel, chid=chid, negative_slope=negative_slope)

    # TODO(synk): for images where a whole (Nb, C, H*W) f32 slab exceeds the
    # VMEM budget (notably on v7x's 64 MiB), add an inner "arbitrary" HW grid
    # axis with a two-pass scheme (partial-sum into a (Nb, C, 1) scratch, then
    # a scale pass once s is known).
    out = pl.pallas_call(
        kernel,
        out_shape=jax.ShapeDtypeStruct((N, C, HW), jnp.float32),
        grid_spec=pltpu.PrefetchScalarGridSpec(
            num_scalar_prefetch=0,
            grid=(grid_n,),
            in_specs=[
                pl.BlockSpec((nb, C, HW), lambda n: (n, 0, 0)),
                pl.BlockSpec((C, 2 * chid), lambda n: (0, 0)),
            ],
            out_specs=pl.BlockSpec((nb, C, HW), lambda n: (n, 0, 0)),
        ),
        compiler_params=pltpu.CompilerParams(
            dimension_semantics=("parallel",),
            vmem_limit_bytes=vmem_limit),
    )(x, w_cat)

    return out.reshape(N, C, H, W)


def _ref_forward(x, l1_weight, l2_weight, negative_slope=0.01):
    """Pure-JAX reference matching the PyTorch SELayer forward (NCHW)."""
    b, c, _, _ = x.shape
    y = jnp.mean(x, axis=(2, 3))                              # (b, c)
    y = y @ l1_weight.T                                       # (b, c//r)
    y = jnp.where(y > 0, y, negative_slope * y)               # LeakyReLU
    y = y @ l2_weight.T                                       # (b, c)
    y = jax.nn.sigmoid(y)
    return x * y[:, :, None, None]


if __name__ == "__main__":
    # Module config: SELayer(c1=32, r=16) -> hidden = 2.
    c1, r = 32, 16
    chid = c1 // r
    N, H, W = 2, 16, 16

    key = jax.random.PRNGKey(0)
    kx, k1, k2 = jax.random.split(key, 3)

    x = jax.random.normal(kx, (N, c1, H, W), dtype=jnp.float32)
    # PyTorch-shaped Linear weights (out_features, in_features), no bias.
    l1_w = jax.random.normal(k1, (chid, c1), dtype=jnp.float32) * 0.3
    l2_w = jax.random.normal(k2, (c1, chid), dtype=jnp.float32) * 0.3

    out = se_forward(x, l1_w, l2_w)
    out = jax.block_until_ready(out)

    ref = _ref_forward(x, l1_w, l2_w)
    assert out.shape == ref.shape
    max_err = float(jnp.max(jnp.abs(out - ref)))
    assert jnp.allclose(out, ref, rtol=1e-5, atol=1e-5), max_err

    print("KERNEL_OK")
</pallas_src>

<mosaic_0001>
module attributes {stable_mosaic.version = 11 : i64} {
  func.func @_se_kernel(%arg0: i32, %arg1: memref<1x32x256xf32, #tpu.memory_space<vmem>>, %arg2: memref<32x4xf32, #tpu.memory_space<vmem>>, %arg3: memref<1x32x256xf32, #tpu.memory_space<vmem>>) attributes {dimension_semantics = [#tpu.dimension_semantics<parallel>], iteration_bounds = array<i64: 2>, scalar_prefetch = 0 : i64, scratch_operands = 0 : i64, tpu.core_type = #tpu.core_type<tc>, window_params = [{transform_indices = @transform_0, window_bounds = array<i64: 1, 32, 256>}, {pipeline_mode = #tpu.pipeline_mode<synchronous>, transform_indices = @transform_1, window_bounds = array<i64: 32, 4>}, {transform_indices = @transform_2, window_bounds = array<i64: 1, 32, 256>}]} {
    %c0 = arith.constant 0 : index
    %c0_0 = arith.constant 0 : index
    %c0_1 = arith.constant 0 : index
    %0 = vector.load %arg1[%c0, %c0_0, %c0_1] : memref<1x32x256xf32, #tpu.memory_space<vmem>>, vector<1x32x256xf32>
    %cst = arith.constant dense<0.000000e+00> : vector<1x32xf32>
    %1 = vector.multi_reduction <add>, %0, %cst [2] : vector<1x32x256xf32> to vector<1x32xf32>
    %2 = vector.shape_cast %1 : vector<1x32xf32> to vector<1x32x1xf32>
    %cst_2 = arith.constant 3.906250e-03 : f32
    %3 = vector.broadcast %cst_2 : f32 to vector<1x32x1xf32>
    %4 = arith.mulf %2, %3 : vector<1x32x1xf32>
    %c0_3 = arith.constant 0 : index
    %c0_4 = arith.constant 0 : index
    %5 = vector.load %arg2[%c0_3, %c0_4] : memref<32x4xf32, #tpu.memory_space<vmem>>, vector<32x2xf32>
    %c0_5 = arith.constant 0 : index
    %c2 = arith.constant 2 : index
    %6 = vector.load %arg2[%c0_5, %c2] : memref<32x4xf32, #tpu.memory_space<vmem>>, vector<32x2xf32>
    %7 = vector.shape_cast %5 : vector<32x2xf32> to vector<1x32x2xf32>
    %8 = vector.broadcast %4 : vector<1x32x1xf32> to vector<1x32x2xf32>
    %9 = arith.mulf %7, %8 : vector<1x32x2xf32>
    %cst_6 = arith.constant dense<0.000000e+00> : vector<1x2xf32>
    %10 = vector.multi_reduction <add>, %9, %cst_6 [1] : vector<1x32x2xf32> to vector<1x2xf32>
    %11 = vector.shape_cast %10 : vector<1x2xf32> to vector<1x1x2xf32>
    %cst_7 = arith.constant 0.000000e+00 : f32
    %12 = vector.broadcast %cst_7 : f32 to vector<1x1x2xf32>
    %13 = arith.cmpf ogt, %11, %12 : vector<1x1x2xf32>
    %cst_8 = arith.constant 0.00999999977 : f32
    %14 = vector.broadcast %cst_8 : f32 to vector<1x1x2xf32>
    %15 = arith.mulf %14, %11 : vector<1x1x2xf32>
    %16 = arith.select %13, %11, %15 : vector<1x1x2xi1>, vector<1x1x2xf32>
    %17 = vector.shape_cast %6 : vector<32x2xf32> to vector<1x32x2xf32>
    %18 = vector.broadcast %16 : vector<1x1x2xf32> to vector<1x32x2xf32>
    %19 = arith.mulf %17, %18 : vector<1x32x2xf32>
    %cst_9 = arith.constant dense<0.000000e+00> : vector<1x32xf32>
    %20 = vector.multi_reduction <add>, %19, %cst_9 [2] : vector<1x32x2xf32> to vector<1x32xf32>
    %21 = vector.shape_cast %20 : vector<1x32xf32> to vector<1x32x1xf32>
    %22 = arith.negf %21 : vector<1x32x1xf32>
    %23 = math.exp %22 : vector<1x32x1xf32>
    %cst_10 = arith.constant 1.000000e+00 : f32
    %24 = vector.broadcast %cst_10 : f32 to vector<1x32x1xf32>
    %25 = arith.addf %24, %23 : vector<1x32x1xf32>
    %26 = arith.divf %24, %25 : vector<1x32x1xf32>
    %27 = vector.broadcast %26 : vector<1x32x1xf32> to vector<1x32x256xf32>
    %28 = arith.mulf %0, %27 : vector<1x32x256xf32>
    %c0_11 = arith.constant 0 : index
    %c0_12 = arith.constant 0 : index
    %c0_13 = arith.constant 0 : index
    %29 = vector.load %arg3[%c0_11, %c0_12, %c0_13] : memref<1x32x256xf32, #tpu.memory_space<vmem>>, vector<1x32x256xf32>
    tpu.vector_store %arg3[%c0_11, %c0_12, %c0_13], %28 {strides = array<i32>} : memref<1x32x256xf32, #tpu.memory_space<vmem>>, vector<1x32x256xf32>,
    return
  }
  func.func @transform_0(%arg0: i32) -> (i32, i32, i32) {
    %c0_i32 = arith.constant 0 : i32
    %c0_i32_0 = arith.constant 0 : i32
    %c0_i32_1 = arith.constant 0 : i32
    return %arg0, %c0_i32, %c0_i32_0 : i32, i32, i32
  }
  func.func @transform_1(%arg0: i32) -> (i32, i32) {
    %c0_i32 = arith.constant 0 : i32
    %c0_i32_0 = arith.constant 0 : i32
    %c0_i32_1 = arith.constant 0 : i32
    return %c0_i32, %c0_i32_0 : i32, i32
  }
  func.func @transform_2(%arg0: i32) -> (i32, i32, i32) {
    %c0_i32 = arith.constant 0 : i32
    %c0_i32_0 = arith.constant 0 : i32
    %c0_i32_1 = arith.constant 0 : i32
    return %arg0, %c0_i32, %c0_i32_0 : i32, i32, i32
  }
}

</mosaic_0001>

<bundles_post_ra>
// kernel: tpu_custom_call.1
= control target key start
LH: loop header
LB: loop body
LE: loop exit
PB: predicated region body
PF: predicated region fallthrough
CT: control target
= control target key end

     0   :  { %7 = vsyncpa [#allocation3], 0  ;;  %s831_s0 = inlined_call_operand.hbm [shape: f32[2,32,256], index: 0, kind: input, shape index: {}]   ;;  %s832_s1 = inlined_call_operand.vmem [shape: f32[32,4], index: 1, kind: input, shape index: {}]   ;;  %s833_s2 = inlined_call_operand.hbm [shape: f32[2,32,256], index: 2, kind: output, shape index: {}]  }
   0x1   :  { %9 = vsyncpa [#allocation3 + $0x1], 0 }
   0x2   :  { %10 = vsyncpa [#allocation4], 0 }
   0x3   :  { %12 = vsyncpa [#allocation4 + $0x1], 0  ;;  %s637_s9 = smov 0   ;;  %s639_s10 = smov 0  }
   0x4   :  { %s641_s11 = smov 0   ;;  %s643_s12 = smov 0  }
   0x5 LB: > { %s658_s13 = sadd.s32 4294967295, %s614_s12   ;;  %s430_s14 = sadd.s32 4294967294, %s614_s12   ;;  %s614_s12 = sphi %s643_s12, %s843_s12   ;;  %s610_s11 = sphi %s641_s11, %s842_s11   ;;  %s606_s10 = sphi %s639_s10, %s841_s10   ;;  %s602_s9 = sphi %s637_s9, %s840_s9  }
   0x6   : > { %s662_s15 = sadd.s32 1, %s614_s12   ;;  %s25_s16 = sadd.s32 1, %s610_s11 }
   0x7   : > { %s22_s17 = ssub.s32 %s614_s12, %s662_s15  ;;  %p32_p0 = scmp.ne.s32.totalorder %s610_s11, %s606_s10 }
   0x8   : > { %p23_p1 = scmp.eq.s32.totalorder %s22_s17, 0  ;;  %p33_p2 = scmp.eq.s32.totalorder %s614_s12, 0 }
   0x9   : > { %p38_p3 = scmp.ne.s32.totalorder %s606_s10, %s602_s9  ;;  %p39_p4 = scmp.eq.s32.totalorder %s658_s13, 0 }
   0xa   : > { %s674_s18 = scalar_select %p23_p1, %s610_s11, %s25_s16  }
   0xb   : > { %p676_p5 = por %p33_p2, %p32_p0  ;;  %p680_p6 = por %p39_p4, %p38_p3 }
   0xc   : > { %p83_p7 = scmp.eq.s32.totalorder %s658_s13, 1  ;;  %p89_p8 = scmp.eq.s32.totalorder %s430_s14, 1 }
   0xd   : > { %p462_p10 = scmp.lt.s32.totalorder %s614_s12, 2  ;;  %s112_s23 = sand.u32 1, %s610_s11  }
   0xe   : > { %p687_p11 = por %p83_p7, %p32_p0  ;;  %p691_p12 = por %p89_p8, %p38_p3 }
   0xf   : > { %s448_s24 = sshll.u32 %s614_s12, 6  ;;  %s433_s25 = sshll.u32 %s112_s23, 6 }
  0x10   : > { %s121_s28 = scalar_lea.hbm %s831_s0, %s448_s24  ;;  %s116_s30 = scalar_lea.vmem [#allocation2], %s433_s25 }
  0x11   : > { %s122_s29 = sshll.u32 %s121_s28, 4  ;;  %s124_s3 = sshll.u32 %s116_s30, 4  ;;  %s123_s29 = int_to_ptr.hbm [resolvable:$true] %s122_s29  ;;  %s125_s3 = int_to_ptr.vmem [resolvable:$true] %s124_s3 }
  0x12   : > { %p702_p13 = pnand %p462_p10, %p676_p5  ;;  %p436_p0 = scmp.ge.s32.totalorder %s614_s12, 1 }
  0x13   : > { %p132_p1 = scmp.lt.s32.totalorder %s614_s12, 3  ;;  %s113_s5 = scalar_lea.sflag [#allocation3], %s112_s23 }
  0x14   : > { %s518_s6 = sshra.s32 %s123_s29, 4  ;;  %p522_p3 = pneg %p702_p13  ;;  %s519_s6 = int_to_ptr.hbm [resolvable:$true] %s518_s6 }
  0x15   : > { %s520_s7 = scalar_lea.hbm %s519_s6, 64  ;;  %s525_s16 = scalar_lea.hbm %s831_s0, 128 }
  0x16   : > { %p521_p2 = scmp.ne.s32.totalorder %s519_s6, %s520_s7  ;;  %p526_p5 = scmp.lt.s32.totalorder %s519_s6, %s831_s0 }
  0x17   : > { %p527_p8 = scmp.lt.s32.totalorder %s525_s16, %s520_s7 }
  0x18   : > { %p523_p4 = pnand %p522_p3, %p521_p2 }
  0x19   : > { %p528_p10 = por %p527_p8, %p526_p5 }
  0x1a   : > { %p524_p7 = pneg %p523_p4 }
  0x1c   : > { %p529_p9 = pnand %p528_p10, %p524_p7 }
  0x1e   : > { %532 = shalt.err (!%p529_p9)
}
  0x1f   : > { %s616_s23 = smov 256   ;;  %s617_s24 = smov 16  }
  0x20   : > { %457 = dma.hbm_to_vmem [thread:$0]  (!%p702_p13), %s123_s29, 1024, %s125_s3, %s113_s5, %s616_s23, %s616_s23, %s617_s24  }
  0x21   : > { %p133_p2 = pnand %p436_p0, %p132_p1 }
  0x22   : > { %s723_s25 = sand.u32 (!%p133_p2), 1, %s606_s10  }
  0x23   : > { %136 = sbr.rel (%p133_p2) target bundleno = 556 (0x22c), region = 28  ;;  %s437_s26 = sshll.u32 (!%p133_p2), %s723_s25, 6 }
  0x24   : > { %s139_s27 = scalar_lea.sflag (!%p133_p2), [#allocation3], %s723_s25  ;;  %s142_s28 = scalar_lea.vmem (!%p133_p2), [#allocation2], %s437_s26 }
  0x28   : > { %593 = dma.done.wait (%p680_p6), %s139_s27, 1024  }
  0x29   : > { %595 = vsyncadd (%p680_p6), %s139_s27, 4294966272  ;;  %v733_v0 = vld [vmem:[%s142_s28] sm:$0xff]  ;;  %v735_v1 = vld [vmem:[%s142_s28 + $0x8] sm:$0xff]  ;;  %vm196_vm0 = vcmask 15360   ;;  %s618_s8 = smov 2   ;;  %s619_s14 = smov 126  }
  0x2a   : > { %v737_v2 = vld [vmem:[%s142_s28 + $0x20] sm:$0xff]  ;;  %v172_v3 = vadd.f32 %v735_v1, %v733_v0  ;;  %v741_v4 = vld [vmem:[%s142_s28 + $0x28] sm:$0xff]  ;;  %v745_v6 = vld [vmem:[%s142_s28 + $0x10] sm:$0xff]  ;;  %s781_s16 = scalar_lea.vmem [#allocation5], %s437_s26  ;;  %s449_s17 = sshll.u32 %s658_s13, 6 }
  0x2b   : > { %v178_v5 = vadd.f32 %v741_v4, %v737_v2  ;;  %v747_v7 = vld [vmem:[%s142_s28 + $0x18] sm:$0xff]  ;;  %v749_v8 = vld [vmem:[%s142_s28 + $0x30] sm:$0xff]  ;;  %v188_v15 = vld [vmem:[%s832_s1] sm:$0xff]  ;;  %s353_s24 = scalar_lea.hbm %s833_s2, %s449_s17  ;;  %s354_s13 = sshll.u32 %s781_s16, 4  ;;  %s355_s13 = int_to_ptr.vmem [resolvable:$true] %s354_s13 }
  0x2c   : > { %173 = vadd.xlane.f32.xlu0 %v172_v3  ;;  %v751_v9 = vld [vmem:[%s142_s28 + $0x38] sm:$0xff]  ;;  %v175_v10 = vadd.f32 %v747_v7, %v745_v6  ;;  %v190_v17 = vld [vmem:[%s832_s1 + $0x10] sm:$0xff]  ;;  %v189_v18 = vld [vmem:[%s832_s1 + $0x8] sm:$0xff]  ;;  %s356_s26 = sshll.u32 %s353_s24, 4  ;;  %s342_s27 = scalar_lea.sflag [#allocation4], %s723_s25  ;;  %s357_s26 = int_to_ptr.hbm [resolvable:$true] %s356_s26 }
  0x2d   : > { %179 = vadd.xlane.f32.xlu1 %v178_v5  ;;  %v181_v11 = vadd.f32 %v751_v9, %v749_v8  ;;  %v191_v22 = vld [vmem:[%s832_s1 + $0x18] sm:$0xff]  ;;  %s562_s28 = sshra.s32 %s357_s26, 4  ;;  %s568_s3 = scalar_lea.hbm %s833_s2, 128  ;;  %s563_s28 = int_to_ptr.hbm [resolvable:$true] %s562_s28 }
  0x2e   : > { %s564_s20 = scalar_lea.hbm %s563_s28, 64  ;;  %p569_p0 = scmp.lt.s32.totalorder %s563_s28, %s833_s2 }
  0x2f   : > { %p565_p6 = scmp.ne.s32.totalorder %s563_s28, %s564_s20  ;;  %p570_p1 = scmp.lt.s32.totalorder %s568_s3, %s564_s20 }
  0x31   : > { %p566_p9 = pnand %p565_p6, %p687_p11  ;;  %p571_p3 = por %p570_p1, %p569_p0 }
  0x33   : > { %p567_p13 = pneg %p566_p9 }
  0x34   : > { %176 = vadd.xlane.f32.xlu0 %v175_v10 }
  0x35   : > { %182 = vadd.xlane.f32.xlu1 %v181_v11  ;;  %p572_p4 = pnand %p571_p3, %p567_p13 }
  0x9f   : > { %v174_v12 = vpop.xlane.xlu0 %173 }
  0xa0   : > { %v180_v13 = vpop.xlane.xlu1 %179  ;;  %v184_v14 = vmul.f32 0.00390625, %v174_v12 }
  0xa1   : > { %v186_v16 = vmul.f32 0.00390625, %v180_v13 }
  0xa2   : > { %v192_v20 = vmul.f32 %v188_v15, %v184_v14 }
  0xa3   : > { %v194_v25 = vmul.f32 %v190_v17, %v186_v16 }
  0xa4   : > { %v197_v28 = vsel %vm196_vm0, %v192_v20, 0.0 }
  0xa5   : > { %v200_v31 = vsel %vm196_vm0, %v194_v25, 0.0 }
  0xa7   : > { %v177_v19 = vpop.xlane.xlu0 %176 }
  0xa8   : > { %v185_v21 = vmul.f32 0.00390625, %v177_v19  ;;  %v183_v23 = vpop.xlane.xlu1 %182 }
  0xa9   : > { %v187_v24 = vmul.f32 0.00390625, %v183_v23 }
  0xaa   : > { %v193_v26 = vmul.f32 %v189_v18, %v185_v21 }
  0xab   : > { %v195_v27 = vmul.f32 %v191_v22, %v187_v24 }
  0xac   : > { %v198_v29 = vsel %vm196_vm0, %v193_v26, 0.0 }
  0xad   : > { %v199_v30 = vadd.f32 %v198_v29, %v197_v28  ;;  %v202_v32 = vsel %vm196_vm0, %v195_v27, 0.0 }
  0xaf   : > { %v201_v33 = vadd.f32 %v200_v31, %v199_v30 }
  0xb1   : > { %v203_v34 = vadd.f32 %v202_v32, %v201_v33 }
  0xb3   : > { %v204_v35 = vrot.slane %v203_v34, 4 }
  0xb5   : > { %v205_v36 = vadd.f32 %v204_v35, %v203_v34 }
  0xb7   : > { %v206_v37 = vrot.slane %v205_v36, 2 }
  0xb9   : > { %v207_v38 = vadd.f32 %v206_v37, %v205_v36 }
  0xbb   : > { %v208_v39 = vrot.slane %v207_v38, 1 }
  0xbd   : > { %v209_v40 = vadd.f32 %v208_v39, %v207_v38 }
  0xbf   : > { %vm210_vm1 = vcmp.gt.f32.partialorder %v209_v40, 0.0  ;;  %v211_v41 = vmul.f32 0.01, %v209_v40 }
  0xc1   : > { %v212_v42 = vsel %vm210_vm1, %v209_v40, %v211_v41 }
  0xc2   : > { %214 = vrot.lane.b32.xlu2 %v212_v42, %s618_s8 }
 0x11c   : > { %v215_v43 = vpop.permute.xlu2 %214 }
 0x11d   : > { %v219_v44 = vmul.f32 %v215_v43, %v190_v17  ;;  %v218_v45 = vmul.f32 %v215_v43, %v189_v18  ;;  %v217_v46 = vmul.f32 %v215_v43, %v188_v15  ;;  %v220_v47 = vmul.f32 %v215_v43, %v191_v22 }
 0x11f   : > { %229 = vrot.lane.b32.xlu1 %v219_v44, %s619_s14  ;;  %227 = vrot.lane.b32.xlu0 %v218_v45, %s619_s14 }
 0x120   : > { %225 = vrot.lane.b32.xlu2 %v217_v46, %s619_s14 }
 0x128   : > { %231 = vrot.lane.b32.xlu2 %v220_v47, %s619_s14 }
 0x17a   : > { %v226_v48 = vpop.permute.xlu2 %225 }
 0x17b   : > { %v237_v49 = vsel %vm196_vm0, %v226_v48, 0.0 }
 0x17c   : > { %238 = vadd.xlane.f32.xlu2 %v237_v49 }
 0x182   : > { %v232_v50 = vpop.permute.xlu2 %231 }
 0x183   : > { %v246_v51 = vsel %vm196_vm0, %v232_v50, 0.0 }
 0x184   : > { %247 = vadd.xlane.f32.xlu2 %v246_v51 }
 0x191   : > { %v230_v52 = vpop.permute.xlu1 %229  ;;  %v228_v53 = vpop.permute.xlu0 %227 }
 0x192   : > { %v243_v54 = vsel %vm196_vm0, %v230_v52, 0.0  ;;  %v240_v55 = vsel %vm196_vm0, %v228_v53, 0.0 }
 0x193   : > { %244 = vadd.xlane.f32.xlu1 %v243_v54  ;;  %241 = vadd.xlane.f32.xlu0 %v240_v55 }
 0x1ef   : > { %v239_v56 = vpop.xlane.xlu2 %238 }
 0x1f0   : > { %v439_v57 = vmul.f32 -1.442695, %v239_v56 }
 0x1f2   : > { %502 = vpow2.f32 %v439_v57 }
 0x1f7   : > { %v248_v58 = vpop.xlane.xlu2 %247 }
 0x1f8   : > { %v503_v59 = vpop.eup %502  ;;  %v442_v60 = vmul.f32 -1.442695, %v248_v58 }
 0x1f9   : > { %v261_v61 = vadd.f32 1.0, %v503_v59 }
 0x1fa   : > { %504 = vpow2.f32 %v442_v60 }
 0x1fb   : > { %506 = vrcp.f32 %v261_v61  ;;  %v276_v11 = vand.u32 2147483648, %v261_v61  ;;  %v274_v13 = vand.u32 2147483647, %v261_v61  ;;  %vm270_vm3 = vweird.f32 %v261_v61 }
 0x1fd   : > { %v277_v20 = vor.u32 1.1754944e-38, %v276_v11  ;;  %vm275_vm5 = vcmp.eq.f32.partialorder %v274_v13, 8.507059e+37 }
 0x200   : > { %v505_v62 = vpop.eup %504 }
 0x201   : > { %v507_v63 = vpop.eup %506  ;;  %v264_v3 = vadd.f32 1.0, %v505_v62 }
 0x202   : > { %v266_v5 = vmul.f32 %v507_v63, %v261_v61  ;;  %vm271_vm2 = vweird.f32 %v507_v63 }
 0x203   : > { %508 = vrcp.f32 %v264_v3  ;;  %vm272_vm4 = vmor %vm270_vm3, %vm271_vm2  ;;  %v321_v27 = vand.u32 2147483648, %v264_v3  ;;  %v319_v29 = vand.u32 2147483647, %v264_v3  ;;  %vm315_vm7 = vweird.f32 %v264_v3 }
 0x204   : > { %v267_v10 = vsub.f32 1.0, %v266_v5 }
 0x205   : > { %vm320_vm9 = vcmp.eq.f32.partialorder %v319_v29, 8.507059e+37 }
 0x206   : > { %v268_v12 = vmul.f32 %v507_v63, %v267_v10  ;;  %v245_v14 = vpop.xlane.xlu1 %244  ;;  %v242_v15 = vpop.xlane.xlu0 %241 }
 0x207   : > { %v441_v16 = vmul.f32 -1.442695, %v245_v14  ;;  %v440_v17 = vmul.f32 -1.442695, %v242_v15 }
 0x208   : > { %v269_v18 = vadd.f32 %v507_v63, %v268_v12 }
 0x209   : > { %v509_v19 = vpop.eup %508  ;;  %510 = vpow2.f32 %v441_v16 }
 0x20a   : > { %v273_v21 = vsel %vm272_vm4, %v507_v63, %v269_v18  ;;  %v311_v22 = vmul.f32 %v509_v19, %v264_v3  ;;  %512 = vpow2.f32 %v440_v17  ;;  %vm316_vm6 = vweird.f32 %v509_v19 }
 0x20b   : > { %v278_v23 = vsel %vm275_vm5, %v277_v20, %v273_v21  ;;  %vm317_vm8 = vmor %vm315_vm7, %vm316_vm6 }
 0x20c   : > { %v325_v24 = vmul.f32 %v278_v23, %v733_v0  ;;  %v326_v25 = vmul.f32 %v278_v23, %v735_v1  ;;  %v312_v26 = vsub.f32 1.0, %v311_v22  ;;  %v322_v1 = vor.u32 1.1754944e-38, %v321_v27 }
 0x20e   : > { %333 = vst [vmem:[%s781_s16] sm:$0xff] %v325_v24  ;;  %v313_v28 = vmul.f32 %v509_v19, %v312_v26 }
 0x20f   : > { %v511_v30 = vpop.eup %510  ;;  %334 = vst [vmem:[%s781_s16 + $0x8] sm:$0xff] %v326_v25 }
 0x210   : > { %v513_v31 = vpop.eup %512  ;;  %v314_v32 = vadd.f32 %v509_v19, %v313_v28  ;;  %v263_v0 = vadd.f32 1.0, %v511_v30 }
 0x211   : > { %v262_v33 = vadd.f32 1.0, %v513_v31 }
 0x212   : > { %v318_v34 = vsel %vm317_vm8, %v509_v19, %v314_v32  ;;  %514 = vrcp.f32 %v263_v0  ;;  %v306_v43 = vand.u32 2147483648, %v263_v0  ;;  %v304_v46 = vand.u32 2147483647, %v263_v0 }
 0x213   : > { %v323_v35 = vsel %vm320_vm9, %v322_v1, %v318_v34  ;;  %516 = vrcp.f32 %v262_v33  ;;  %v291_v47 = vand.u32 2147483648, %v262_v33  ;;  %vm300_vm12 = vweird.f32 %v263_v0 }
 0x214   : > { %v331_v36 = vmul.f32 %v323_v35, %v749_v8  ;;  %v332_v37 = vmul.f32 %v323_v35, %v751_v9  ;;  %v289_v8 = vand.u32 2147483647, %v262_v33  ;;  %v307_v9 = vor.u32 1.1754944e-38, %v306_v43 }
 0x215   : > { %vm285_vm14 = vweird.f32 %v262_v33  ;;  %vm305_vm15 = vcmp.eq.f32.partialorder %v304_v46, 8.507059e+37  ;;  %v292_v52 = vor.u32 1.1754944e-38, %v291_v47 }
 0x216   : > { %339 = vst [vmem:[%s781_s16 + $0x30] sm:$0xff] %v331_v36  ;;  %vm290_vm1 = vcmp.eq.f32.partialorder %v289_v8, 8.507059e+37 }
 0x217   : > { %340 = vst [vmem:[%s781_s16 + $0x38] sm:$0xff] %v332_v37 }
 0x218   : > { %v515_v38 = vpop.eup %514 }
 0x219   : > { %v517_v39 = vpop.eup %516  ;;  %v296_v40 = vmul.f32 %v515_v38, %v263_v0  ;;  %vm301_vm10 = vweird.f32 %v515_v38 }
 0x21a   : > { %v281_v41 = vmul.f32 %v517_v39, %v262_v33  ;;  %vm286_vm11 = vweird.f32 %v517_v39  ;;  %vm302_vm13 = vmor %vm300_vm12, %vm301_vm10 }
 0x21b   : > { %v297_v42 = vsub.f32 1.0, %v296_v40  ;;  %vm287_vm0 = vmor %vm285_vm14, %vm286_vm11 }
 0x21c   : > { %v282_v44 = vsub.f32 1.0, %v281_v41 }
 0x21d   : > { %v298_v45 = vmul.f32 %v515_v38, %v297_v42 }
 0x21e   : > { %v283_v48 = vmul.f32 %v517_v39, %v282_v44 }
 0x21f   : > { %v299_v49 = vadd.f32 %v515_v38, %v298_v45 }
 0x220   : > { %v284_v50 = vadd.f32 %v517_v39, %v283_v48 }
 0x221   : > { %v303_v51 = vsel %vm302_vm13, %v515_v38, %v299_v49 }
 0x222   : > { %v308_v53 = vsel %vm305_vm15, %v307_v9, %v303_v51  ;;  %v288_v54 = vsel %vm287_vm0, %v517_v39, %v284_v50 }
 0x223   : > { %v329_v55 = vmul.f32 %v308_v53, %v737_v2  ;;  %v330_v56 = vmul.f32 %v308_v53, %v741_v4  ;;  %v293_v57 = vsel %vm290_vm1, %v292_v52, %v288_v54 }
 0x224   : > { %v327_v58 = vmul.f32 %v293_v57, %v745_v6  ;;  %v328_v59 = vmul.f32 %v293_v57, %v747_v7 }
 0x225   : > { %337 = vst [vmem:[%s781_s16 + $0x20] sm:$0xff] %v329_v55 }
 0x226   : > { %338 = vst [vmem:[%s781_s16 + $0x28] sm:$0xff] %v330_v56 }
 0x227   : > { %335 = vst [vmem:[%s781_s16 + $0x10] sm:$0xff] %v327_v58 }
 0x228   : > { %336 = vst [vmem:[%s781_s16 + $0x18] sm:$0xff] %v328_v59 }
 0x229   : > { %575 = shalt.err (!%p572_p4)
}
 0x22a   : > { %s620_s25 = smov 256   ;;  %s621_s6 = smov 16  }
 0x22b   : > { %452 = dma.vmem_to_hbm [thread:$0]  (%p687_p11), %s355_s13, 1024, %s357_s26, %s342_s27, %s620_s25, %s620_s25, %s621_s6  }
 0x22c PF: > { %s371_s7 = sand.u32 1, %s602_s9   ;;  %p839_p7 = scmp.ge.s32.totalorder %s614_s12, 2 }
 0x22d   : > { %s372_s8 = scalar_lea.sflag [#allocation4], %s371_s7 }
 0x22e   : > { %p459_p5 = pnand %p839_p7, %p691_p12 }
 0x230   : > { %p460_p8 = pneg %p459_p5 }
 0x232   : > { %597 = dma.done.wait (%p460_p8), %s372_s8, 1024  }
 0x233   : > { %599 = vsyncadd (%p460_p8), %s372_s8, 4294966272  ;;  %p15_p10 = scmp.ge.s32.totalorder %s662_s15, 4   ;;  %s840_s9 = smov %s606_s10 }
 0x234   : > { %s841_s10 = smov %s610_s11  ;;  %s842_s11 = smov %s674_s18 }
 0x235   : > { %s843_s12 = smov %s662_s15  ;;  %17 = sbr.rel (!%p15_p10) target bundleno = 5 (0x5), region = 73 }
 0x23a   :  { %378 = vsyncpa [#allocation3], 1 }
 0x23b   :  { %380 = vsyncpa [#allocation3 + $0x1], 1 }
 0x23c   :  { %381 = vsyncpa [#allocation4], 1 }
 0x23d   :  { %383 = vsyncpa [#allocation4 + $0x1], 1 }

</bundles_post_ra>
